<compile_context>
chip_gen: v7x
topology: tpu7x:2x2x1
jax: 0.10.0
libtpu: 0.0.40
codegen_flags: <defaults>
</compile_context>

<pallas_src>
import functools

import jax
import jax.numpy as jnp
from jax.experimental import pallas as pl
from jax.experimental.pallas import tpu as pltpu


def _focal_loss_kernel(logits_ref, targets_ref, alpha_ref, out_ref, acc_ref,
                       *, gamma, epsilon, s_valid):
    j = pl.program_id(1)
    nj = pl.num_programs(1)

    @pl.when(j == 0)
    def _():
        acc_ref[...] = jnp.zeros_like(acc_ref)

    x = logits_ref[0].astype(jnp.float32)            # (C, T)  classes on sublane
    t = targets_ref[0]                               # (1, T)  int32
    alpha_vec = alpha_ref[...].astype(jnp.float32)   # (C, 1)

    c, tl = x.shape
    cls = jax.lax.broadcasted_iota(jnp.int32, (c, tl), 0)
    onehot = (cls == t).astype(jnp.float32)          # (C, T)

    # Numerically stable softmax cross entropy; class axis = sublanes.
    m = jnp.max(x, axis=0, keepdims=True)                        # (1, T)
    ex = jnp.exp(x - m)                                          # (C, T) only big EUP op
    sumexp = jnp.sum(ex, axis=0, keepdims=True)                  # (1, T)
    tgt_logit = jnp.sum(x * onehot, axis=0, keepdims=True)       # (1, T)
    ce = jnp.log(sumexp) + m - tgt_logit                         # (1, T)

    # pt = exp(-ce) without an extra transcendental: reuse exp(x - m).
    exp_tgt = jnp.sum(ex * onehot, axis=0, keepdims=True)        # exp(x[t] - m)
    pt = exp_tgt / sumexp                                        # (1, T)

    alpha_t = jnp.sum(alpha_vec * onehot, axis=0, keepdims=True)  # (1, T)

    base = 1.0 - pt + epsilon
    g = float(gamma)
    if g == int(g) and 0 <= int(g) <= 16:
        # Integer gamma (the common gamma=2): repeated multiply on the VPU
        # instead of the exp/log float-pow on the EUP.  Also NaN-safe if pt
        # rounds a hair above 1.
        p = jnp.ones_like(base)
        for _ in range(int(g)):
            p = p * base
    else:
        p = jnp.maximum(base, 0.0) ** g   # clamp: avoid NaN from pow(<0, frac)
    focal = alpha_t * p * ce                                     # (1, T)

    # Interior tiles accumulate unmasked (pure VPU add into a lane-wide
    # accumulator); only the last spatial tile masks lanes past the true
    # spatial extent.
    @pl.when(j < nj - 1)
    def _():
        acc_ref[...] += focal

    @pl.when(j == nj - 1)
    def _():
        lane = jax.lax.broadcasted_iota(jnp.int32, (1, tl), 1) + j * tl
        acc_ref[...] += jnp.where(lane < s_valid, focal, 0.0)
        # Per-batch partial sum, broadcast across the 128-lane output block.
        out_ref[...] = jnp.broadcast_to(jnp.sum(acc_ref[...]), out_ref.shape)


def focal_loss(logits, targets, *, alpha=0.25, gamma=2.0,
               reduction='mean', epsilon=1e-6, tile_lanes=None):
    """Focal loss matching torch FocalLoss.forward semantics.

    logits: (N, C) or (N, C, *spatial) float array (f32 or bf16, kept as-is)
    targets: (N,) or (N, *spatial) integer class indices
    """
    if reduction not in ('mean', 'sum'):
        # TODO(synk): reduction='none' (per-element output) not implemented here.
        raise NotImplementedError("reduction must be 'mean' or 'sum'")

    num_classes = logits.shape[1]

    if logits.ndim > 2:
        n = logits.shape[0]
        s = 1
        for d in logits.shape[2:]:
            s *= d
        x = logits.reshape(n, num_classes, s)        # free reshape, no transpose
        t = targets.reshape(n, 1, s)
    else:
        # (N, C) classification: one "batch" row, samples on the lane axis.
        n, s = 1, logits.shape[0]
        x = logits.T.reshape(1, num_classes, s)
        t = targets.reshape(1, 1, s)
    n_elems = n * s

    # Per-class alpha column (scalar alpha broadcasts to all classes —
    # identical semantics since alpha[target] is then the same scalar).
    if isinstance(alpha, (list, tuple)):
        if len(alpha) != num_classes:
            raise ValueError("alpha length must match number of classes")
        alpha_col = jnp.asarray(alpha, jnp.float32).reshape(num_classes, 1)
    else:
        alpha_col = jnp.full((num_classes, 1), float(alpha), jnp.float32)

    # Lane tile: big enough to amortize the ~0.35us per-grid-step overhead,
    # shrunk when C is large so double-buffered blocks stay well inside the
    # scoped VMEM limit on every TPU generation (incl. v7x's smaller VMEM).
    if tile_lanes is None:
        block_budget = 512 * 1024                    # bytes per logits block
        per_lane = num_classes * jnp.dtype(x.dtype).itemsize
        tile_lanes = (block_budget // max(per_lane, 1)) // 128 * 128
        tile_lanes = int(max(128, min(tile_lanes, 16384)))
    tile_lanes = int(min(tile_lanes, pl.cdiv(s, 128) * 128))
    tile_lanes = max(128, (tile_lanes // 128) * 128)

    s_pad = pl.cdiv(s, tile_lanes) * tile_lanes
    if s_pad != s:
        x = jnp.pad(x, ((0, 0), (0, 0), (0, s_pad - s)))
        t = jnp.pad(t, ((0, 0), (0, 0), (0, s_pad - s)))
    t = t.astype(jnp.int32)

    kernel = functools.partial(
        _focal_loss_kernel,
        gamma=float(gamma), epsilon=float(epsilon), s_valid=int(s))

    grid = (n, s_pad // tile_lanes)
    partials = pl.pallas_call(
        kernel,
        out_shape=jax.ShapeDtypeStruct((n, 1, 128), jnp.float32),
        grid_spec=pltpu.PrefetchScalarGridSpec(
            num_scalar_prefetch=0,
            grid=grid,
            in_specs=[
                # Logits stay in the caller's dtype in HBM/VMEM (bf16 stays
                # bf16 — halves DMA traffic); upcast to f32 inside the kernel.
                pl.BlockSpec((1, num_classes, tile_lanes),
                             lambda i, j: (i, 0, j)),
                pl.BlockSpec((1, 1, tile_lanes), lambda i, j: (i, 0, j)),
                pl.BlockSpec((num_classes, 1), lambda i, j: (0, 0)),
            ],
            out_specs=pl.BlockSpec((1, 1, 128), lambda i, j: (i, 0, 0)),
            scratch_shapes=[pltpu.VMEM((1, tile_lanes), jnp.float32)],
        ),
        compiler_params=pltpu.CompilerParams(
            dimension_semantics=("parallel", "arbitrary")),
    )(x, t, alpha_col)

    total = jnp.sum(partials[:, 0, 0])
    if reduction == 'mean':
        return total / jnp.float32(n_elems)
    return total


def _focal_loss_ref(logits, targets, alpha=0.25, gamma=2.0, epsilon=1e-6,
                    reduction='mean'):
    """Pure-JAX reference for sanity checking."""
    c = logits.shape[1]
    if logits.ndim > 2:
        perm = (0,) + tuple(range(2, logits.ndim)) + (1,)
        x = jnp.transpose(logits, perm).reshape(-1, c).astype(jnp.float32)
    else:
        x = logits.astype(jnp.float32)
    t = targets.reshape(-1)
    logp = jax.nn.log_softmax(x, axis=-1)
    ce = -jnp.take_along_axis(logp, t[:, None], axis=-1)[:, 0]
    pt = jnp.exp(-ce)
    if isinstance(alpha, (list, tuple)):
        a = jnp.asarray(alpha, jnp.float32)[t]
    else:
        a = float(alpha)
    focal = a * (1.0 - pt + epsilon) ** gamma * ce
    return jnp.mean(focal) if reduction == 'mean' else jnp.sum(focal)


if __name__ == "__main__":
    key = jax.random.PRNGKey(0)
    k1, k2 = jax.random.split(key)

    # Small NCHW logits + per-pixel integer targets (dense prediction case).
    N, C, H, W = 2, 4, 16, 16
    logits = jax.random.normal(k1, (N, C, H, W), jnp.float32)
    targets = jax.random.randint(k2, (N, H, W), 0, C, jnp.int32)

    # Scalar alpha, mean reduction.
    loss = focal_loss(logits, targets, alpha=0.25, gamma=2.0,
                      reduction='mean', epsilon=1e-6)
    loss = jax.block_until_ready(loss)
    ref = _focal_loss_ref(logits, targets, alpha=0.25, gamma=2.0,
                          epsilon=1e-6, reduction='mean')
    assert jnp.allclose(loss, ref, rtol=1e-4, atol=1e-6), (loss, ref)

    # Per-class alpha list, sum reduction (exercises the alpha-gather path).
    alpha_list = [0.1, 0.2, 0.3, 0.4]
    loss2 = focal_loss(logits, targets, alpha=alpha_list, gamma=2.0,
                       reduction='sum', epsilon=1e-6)
    loss2 = jax.block_until_ready(loss2)
    ref2 = _focal_loss_ref(logits, targets, alpha=alpha_list, gamma=2.0,
                           epsilon=1e-6, reduction='sum')
    assert jnp.allclose(loss2, ref2, rtol=1e-4, atol=1e-5), (loss2, ref2)

    print("KERNEL_OK")
</pallas_src>

<mosaic_0001>
module attributes {stable_mosaic.version = 11 : i64} {
  func.func @_focal_loss_kernel(%arg0: i32, %arg1: i32, %arg2: memref<1x4x256xf32, #tpu.memory_space<vmem>>, %arg3: memref<1x1x256xi32, #tpu.memory_space<vmem>>, %arg4: memref<4x1xf32, #tpu.memory_space<vmem>>, %arg5: memref<1x1x128xf32, #tpu.memory_space<vmem>>, %arg6: memref<1x256xf32, #tpu.memory_space<vmem>>) attributes {dimension_semantics = [#tpu.dimension_semantics<parallel>, #tpu.dimension_semantics<arbitrary>], iteration_bounds = array<i64: 2, 1>, scalar_prefetch = 0 : i64, scratch_operands = 1 : i64, tpu.core_type = #tpu.core_type<tc>, window_params = [{transform_indices = @transform_0, window_bounds = array<i64: 1, 4, 256>}, {transform_indices = @transform_1, window_bounds = array<i64: 1, 1, 256>}, {pipeline_mode = #tpu.pipeline_mode<synchronous>, transform_indices = @transform_2, window_bounds = array<i64: 4, 1>}, {transform_indices = @transform_3, window_bounds = array<i64: 1, 1, 128>}]} {
    %c0_i32 = arith.constant 0 : i32
    %0 = arith.cmpi eq, %arg1, %c0_i32 : i32
    %1 = arith.extui %0 : i1 to i32
    %c0_i32_0 = arith.constant 0 : i32
    %2 = arith.cmpi ne, %1, %c0_i32_0 : i32
    scf.if %2 {
      %cst_19 = arith.constant 0.000000e+00 : f32
      %49 = vector.broadcast %cst_19 : f32 to vector<1x256xf32>
      %c0_20 = arith.constant 0 : index
      %c0_21 = arith.constant 0 : index
      %50 = vector.load %arg6[%c0_20, %c0_21] : memref<1x256xf32, #tpu.memory_space<vmem>>, vector<1x256xf32>
      tpu.vector_store %arg6[%c0_20, %c0_21], %49 {strides = array<i32>} : memref<1x256xf32, #tpu.memory_space<vmem>>, vector<1x256xf32>,
    } else {
    }
    %c0 = arith.constant 0 : index
    %c0_1 = arith.constant 0 : index
    %c0_2 = arith.constant 0 : index
    %3 = vector.load %arg2[%c0, %c0_1, %c0_2] : memref<1x4x256xf32, #tpu.memory_space<vmem>>, vector<1x4x256xf32>
    %4 = vector.shape_cast %3 : vector<1x4x256xf32> to vector<4x256xf32>
    %c0_3 = arith.constant 0 : index
    %c0_4 = arith.constant 0 : index
    %c0_5 = arith.constant 0 : index
    %5 = vector.load %arg3[%c0_3, %c0_4, %c0_5] : memref<1x1x256xi32, #tpu.memory_space<vmem>>, vector<1x1x256xi32>
    %6 = vector.shape_cast %5 : vector<1x1x256xi32> to vector<1x256xi32>
    %c0_6 = arith.constant 0 : index
    %c0_7 = arith.constant 0 : index
    %7 = vector.load %arg4[%c0_6, %c0_7] : memref<4x1xf32, #tpu.memory_space<vmem>>, vector<4x1xf32>
    %8 = tpu.iota {dimensions = array<i32: 0>} : vector<4x256xi32>
    %9 = vector.broadcast %6 : vector<1x256xi32> to vector<4x256xi32>
    %10 = arith.cmpi eq, %8, %9 : vector<4x256xi32>
    %11 = arith.extui %10 : vector<4x256xi1> to vector<4x256xi32>
    %12 = arith.sitofp %11 : vector<4x256xi32> to vector<4x256xf32>
    %cst = arith.constant dense<0xFF800000> : vector<256xf32>
    %13 = vector.multi_reduction <maximumf>, %4, %cst [0] : vector<4x256xf32> to vector<256xf32>
    %14 = vector.shape_cast %13 : vector<256xf32> to vector<1x256xf32>
    %15 = vector.broadcast %14 : vector<1x256xf32> to vector<4x256xf32>
    %16 = arith.subf %4, %15 : vector<4x256xf32>
    %17 = math.exp %16 : vector<4x256xf32>
    %cst_8 = arith.constant dense<0.000000e+00> : vector<256xf32>
    %18 = vector.multi_reduction <add>, %17, %cst_8 [0] : vector<4x256xf32> to vector<256xf32>
    %19 = vector.shape_cast %18 : vector<256xf32> to vector<1x256xf32>
    %20 = arith.mulf %4, %12 : vector<4x256xf32>
    %cst_9 = arith.constant dense<0.000000e+00> : vector<256xf32>
    %21 = vector.multi_reduction <add>, %20, %cst_9 [0] : vector<4x256xf32> to vector<256xf32>
    %22 = vector.shape_cast %21 : vector<256xf32> to vector<1x256xf32>
    %23 = math.log %19 : vector<1x256xf32>
    %24 = arith.addf %23, %14 : vector<1x256xf32>
    %25 = arith.subf %24, %22 : vector<1x256xf32>
    %26 = arith.mulf %17, %12 : vector<4x256xf32>
    %cst_10 = arith.constant dense<0.000000e+00> : vector<256xf32>
    %27 = vector.multi_reduction <add>, %26, %cst_10 [0] : vector<4x256xf32> to vector<256xf32>
    %28 = vector.shape_cast %27 : vector<256xf32> to vector<1x256xf32>
    %29 = arith.divf %28, %19 : vector<1x256xf32>
    %30 = vector.broadcast %7 : vector<4x1xf32> to vector<4x256xf32>
    %31 = arith.mulf %30, %12 : vector<4x256xf32>
    %cst_11 = arith.constant dense<0.000000e+00> : vector<256xf32>
    %32 = vector.multi_reduction <add>, %31, %cst_11 [0] : vector<4x256xf32> to vector<256xf32>
    %33 = vector.shape_cast %32 : vector<256xf32> to vector<1x256xf32>
    %cst_12 = arith.constant 1.000000e+00 : f32
    %34 = vector.broadcast %cst_12 : f32 to vector<1x256xf32>
    %35 = arith.subf %34, %29 : vector<1x256xf32>
    %cst_13 = arith.constant 9.99999997E-7 : f32
    %36 = vector.broadcast %cst_13 : f32 to vector<1x256xf32>
    %37 = arith.addf %35, %36 : vector<1x256xf32>
    %cst_14 = arith.constant 1.000000e+00 : f32
    %38 = vector.broadcast %cst_14 : f32 to vector<1x256xf32>
    %39 = arith.mulf %38, %37 : vector<1x256xf32>
    %40 = arith.mulf %39, %37 : vector<1x256xf32>
    %41 = arith.mulf %33, %40 : vector<1x256xf32>
    %42 = arith.mulf %41, %25 : vector<1x256xf32>
    %c0_i32_15 = arith.constant 0 : i32
    %43 = arith.cmpi slt, %arg1, %c0_i32_15 : i32
    %44 = arith.extui %43 : i1 to i32
    %c0_i32_16 = arith.constant 0 : i32
    %45 = arith.cmpi ne, %44, %c0_i32_16 : i32
    scf.if %45 {
      %c0_19 = arith.constant 0 : index
      %c0_20 = arith.constant 0 : index
      %49 = vector.load %arg6[%c0_19, %c0_20] : memref<1x256xf32, #tpu.memory_space<vmem>>, vector<1x256xf32>
      %50 = arith.addf %49, %42 : vector<1x256xf32>
      %c0_21 = arith.constant 0 : index
      %c0_22 = arith.constant 0 : index
      %51 = vector.load %arg6[%c0_21, %c0_22] : memref<1x256xf32, #tpu.memory_space<vmem>>, vector<1x256xf32>
      tpu.vector_store %arg6[%c0_21, %c0_22], %50 {strides = array<i32>} : memref<1x256xf32, #tpu.memory_space<vmem>>, vector<1x256xf32>,
    } else {
    }
    %c0_i32_17 = arith.constant 0 : i32
    %46 = arith.cmpi eq, %arg1, %c0_i32_17 : i32
    %47 = arith.extui %46 : i1 to i32
    %c0_i32_18 = arith.constant 0 : i32
    %48 = arith.cmpi ne, %47, %c0_i32_18 : i32
    scf.if %48 {
      %49 = tpu.iota {dimensions = array<i32: 1>} : vector<1x256xi32>
      %c256_i32 = arith.constant 256 : i32
      %50 = arith.muli %arg1, %c256_i32 : i32
      %51 = vector.broadcast %50 : i32 to vector<1x256xi32>
      %52 = arith.addi %49, %51 : vector<1x256xi32>
      %c0_19 = arith.constant 0 : index
      %c0_20 = arith.constant 0 : index
      %53 = vector.load %arg6[%c0_19, %c0_20] : memref<1x256xf32, #tpu.memory_space<vmem>>, vector<1x256xf32>
      %c256_i32_21 = arith.constant 256 : i32
      %54 = vector.broadcast %c256_i32_21 : i32 to vector<1x256xi32>
      %55 = arith.cmpi slt, %52, %54 : vector<1x256xi32>
      %cst_22 = arith.constant 0.000000e+00 : f32
      %56 = vector.broadcast %cst_22 : f32 to vector<1x256xf32>
      %57 = arith.select %55, %42, %56 : vector<1x256xi1>, vector<1x256xf32>
      %58 = arith.addf %53, %57 : vector<1x256xf32>
      %c0_23 = arith.constant 0 : index
      %c0_24 = arith.constant 0 : index
      %59 = vector.load %arg6[%c0_23, %c0_24] : memref<1x256xf32, #tpu.memory_space<vmem>>, vector<1x256xf32>
      tpu.vector_store %arg6[%c0_23, %c0_24], %58 {strides = array<i32>} : memref<1x256xf32, #tpu.memory_space<vmem>>, vector<1x256xf32>,
      %c0_25 = arith.constant 0 : index
      %c0_26 = arith.constant 0 : index
      %60 = vector.load %arg6[%c0_25, %c0_26] : memref<1x256xf32, #tpu.memory_space<vmem>>, vector<1x256xf32>
      %61 = vector.shape_cast %60 : vector<1x256xf32> to vector<1x1x256xf32>
      %cst_27 = arith.constant dense<0.000000e+00> : vector<1xf32>
      %62 = vector.multi_reduction <add>, %61, %cst_27 [1, 2] : vector<1x1x256xf32> to vector<1xf32>
      %63 = vector.shape_cast %62 : vector<1xf32> to vector<1x1x1xf32>
      %64 = vector.extract %63[0, 0, 0] : f32 from vector<1x1x1xf32>
      %65 = vector.broadcast %64 : f32 to vector<1x1x128xf32>
      %c0_28 = arith.constant 0 : index
      %c0_29 = arith.constant 0 : index
      %c0_30 = arith.constant 0 : index
      %66 = vector.load %arg5[%c0_28, %c0_29, %c0_30] : memref<1x1x128xf32, #tpu.memory_space<vmem>>, vector<1x1x128xf32>
      tpu.vector_store %arg5[%c0_28, %c0_29, %c0_30], %65 {strides = array<i32>} : memref<1x1x128xf32, #tpu.memory_space<vmem>>, vector<1x1x128xf32>,
    } else {
    }
    return
  }
  func.func @transform_0(%arg0: i32, %arg1: i32) -> (i32, i32, i32) {
    %c0_i32 = arith.constant 0 : i32
    %c0_i32_0 = arith.constant 0 : i32
    return %arg0, %c0_i32, %arg1 : i32, i32, i32
  }
  func.func @transform_1(%arg0: i32, %arg1: i32) -> (i32, i32, i32) {
    %c0_i32 = arith.constant 0 : i32
    %c0_i32_0 = arith.constant 0 : i32
    return %arg0, %c0_i32, %arg1 : i32, i32, i32
  }
  func.func @transform_2(%arg0: i32, %arg1: i32) -> (i32, i32) {
    %c0_i32 = arith.constant 0 : i32
    %c0_i32_0 = arith.constant 0 : i32
    %c0_i32_1 = arith.constant 0 : i32
    return %c0_i32, %c0_i32_0 : i32, i32
  }
  func.func @transform_3(%arg0: i32, %arg1: i32) -> (i32, i32, i32) {
    %c0_i32 = arith.constant 0 : i32
    %c0_i32_0 = arith.constant 0 : i32
    %c0_i32_1 = arith.constant 0 : i32
    return %arg0, %c0_i32, %c0_i32_0 : i32, i32, i32
  }
}

</mosaic_0001>

<bundles_post_ra>
// kernel: tpu_custom_call.1
= control target key start
LH: loop header
LB: loop body
LE: loop exit
PB: predicated region body
PF: predicated region fallthrough
CT: control target
= control target key end

     0   :  { %8 = vsyncpa [#allocation4], 0  ;;  %s1053_s0 = inlined_call_operand.hbm [shape: f32[2,4,256], index: 0, kind: input, shape index: {}]   ;;  %s1054_s1 = inlined_call_operand.vmem [shape: s32[2,1,256], index: 1, kind: input, shape index: {}]   ;;  %s1055_s2 = inlined_call_operand.vmem [shape: f32[4,1], index: 2, kind: input, shape index: {}]   ;;  %s1056_s3 = inlined_call_operand.hbm [shape: f32[2,1,128], index: 3, kind: output, shape index: {}]  }
   0x1   :  { %10 = vsyncpa [#allocation4 + $0x1], 0 }
   0x2   :  { %11 = vsyncpa [#allocation5], 0 }
   0x3   :  { %13 = vsyncpa [#allocation5 + $0x1], 0  ;;  %s823_s12 = smov 0   ;;  %s825_s13 = smov 0  }
   0x4   :  { %s827_s14 = smov 0   ;;  %s829_s15 = smov 0  }
   0x5   :  { %s831_s16 = smov 0   ;;  %s833_s17 = smov 0  }
   0x6 LB: > { %s589_s18 = sadd.s32 4294967295, %s796_s17   ;;  %s590_s19 = sadd.s32 4294967294, %s796_s17   ;;  %s796_s17 = sphi %s833_s17, %s19_s17   ;;  %s792_s16 = sphi %s831_s16, %s1074_s16   ;;  %s788_s15 = sphi %s829_s15, %s1073_s15   ;;  %s784_s14 = sphi %s827_s14, %s1072_s14   ;;  %s780_s13 = sphi %s825_s13, %s1071_s13   ;;  %s776_s12 = sphi %s823_s12, %s1070_s12  }
   0x7   : > { %s31_s20 = sadd.s32 1, %s792_s16  ;;  %s40_s21 = sadd.s32 1, %s784_s14 }
   0x8   : > { %p33_p0 = scmp.ge.s32.totalorder %s31_s20, 2  ;;  %p47_p1 = scmp.ne.s32.totalorder %s784_s14, %s780_s13 }
   0x9   : > { %p48_p2 = scmp.eq.s32.totalorder %s796_s17, 0  ;;  %p53_p3 = scmp.ne.s32.totalorder %s780_s13, %s776_s12 }
   0xa   : > { %s1076_s20 = smov (%p33_p0, %s31_s20), 0  ;;  %p54_p5 = scmp.eq.s32.totalorder %s589_s18, 0 }
   0xb   : > { %p864_p4 = por %p48_p2, %p47_p1  ;;  %s35_s23 = ssub.s32 %s792_s16, %s1076_s20 }
   0xc   : > { %p126_p6 = scmp.eq.s32.totalorder %s589_s18, 1  ;;  %p38_p7 = scmp.eq.s32.totalorder %s35_s23, 0 }
   0xd   : > { %p870_p8 = por %p54_p5, %p53_p3  ;;  %p132_p10 = scmp.eq.s32.totalorder %s590_s19, 1 }
   0xe   : > { %p874_p9 = por %p126_p6, %p47_p1  ;;  %p619_p13 = scmp.lt.s32.totalorder %s796_s17, 2 }
   0xf   : > { %s879_s26 = scalar_select %p38_p7, %s784_s14, %s40_s21  }
  0x10   : > { %s1060_s25 = scalar_select %p874_p9, 1, 0 }
  0x11   : > { %p881_p11 = por %p132_p10, %p53_p3  ;;  %s155_s28 = sand.u32 1, %s784_s14  }
  0x12   : > { %s593_s29 = sshll.u32 %s155_s28, 3  ;;  %s604_s30 = sshll.u32 %s792_s16, 7 }
  0x13   : > { %s1061_s27 = scalar_select %p881_p11, 1, 0 }
  0x14   : > { %s892_s6 = scalar_lea.hbm %s1053_s0, %s604_s30  ;;  %s159_s7 = scalar_lea.vmem [#allocation3], %s593_s29 }
  0x15   : > { %s169_s8 = sshll.u32 %s159_s7, 4  ;;  %p898_p0 = pnand %p619_p13, %p864_p4  ;;  %s894_s8 = int_to_ptr.vmem [resolvable:$true] %s169_s8 }
  0x16   : > { %s156_s10 = scalar_lea.sflag [#allocation4], %s155_s28  ;;  %s684_s11 = scalar_lea.hbm %s892_s6, 128 }
  0x17   : > { %p685_p3 = scmp.ne.s32.totalorder %s892_s6, %s684_s11  ;;  %p686_p5 = pneg %p898_p0 }
  0x18   : > { %s689_s21 = scalar_lea.hbm %s1053_s0, 256  ;;  %p690_p4 = scmp.lt.u32.totalorder %s892_s6, %s1053_s0 }
  0x19   : > { %p687_p6 = pnand %p686_p5, %p685_p3  ;;  %p691_p10 = scmp.lt.u32.totalorder %s689_s21, %s684_s11 }
  0x1a   : > { %p693_p12 = scmp.lt.u32.totalorder %s684_s11, %s892_s6 }
  0x1b   : > { %p688_p7 = pneg %p687_p6  ;;  %p692_p13 = por %p691_p10, %p690_p4 }
  0x1d   : > { %p694_p1 = por %p693_p12, %p692_p13 }
  0x1f   : > { %p695_p2 = pnand %p694_p1, %p688_p7 }
  0x21   : > { %698 = shalt.err (!%p695_p2)
}
  0x22   : > { %s699_s28 = scalar_lea.vmem %s894_s8, 128  ;;  %s798_s29 = smov [#allocation3]  }
  0x23   : > { %p700_p3 = scmp.ne.s32.totalorder %s894_s8, %s699_s28  ;;  %s704_s30 = sshll.u32 %s798_s29, 4  ;;  %s705_s30 = int_to_ptr.vmem [resolvable:$false] %s704_s30 }
  0x24   : > { %s706_s4 = scalar_lea.vmem %s705_s30, 256  ;;  %p707_p9 = scmp.lt.s32.totalorder %s894_s8, %s705_s30 }
  0x25   : > { %p702_p6 = pnand %p700_p3, %p686_p5  ;;  %p708_p4 = scmp.lt.s32.totalorder %s706_s4, %s699_s28 }
  0x27   : > { %p703_p11 = pneg %p702_p6  ;;  %p709_p10 = por %p708_p4, %p707_p9 }
  0x29   : > { %p710_p12 = pnand %p709_p10, %p703_p11 }
  0x2b   : > { %713 = shalt.err (!%p710_p12)
}
  0x2c   : > { %614 = dma.hbm_to_vmem [thread:$0]  (!%p898_p0), %s892_s6, 128, %s894_s8, %s156_s10  }
  0x2d   : > { %p1063_p1 = scmp.lt.s32.totalorder %s796_s17, 3  ;;  %p1064_p2 = scmp.ge.s32.totalorder %s796_s17, 1 }
  0x2f   : > { %p187_p5 = pnand %p1064_p2, %p1063_p1 }
  0x30   : > { %s934_s5 = sand.u32 (!%p187_p5), 1, %s780_s13  }
  0x31   : > { %190 = sbr.rel (%p187_p5) target bundleno = 446 (0x1be), region = 32  ;;  %s597_s7 = sshll.u32 (!%p187_p5), %s934_s5, 3 }
  0x32   : > { %s193_s11 = scalar_lea.sflag (!%p187_p5), [#allocation4], %s934_s5  ;;  %s196_s18 = scalar_lea.vmem (!%p187_p5), [#allocation3], %s597_s7 }
  0x38   : > { %767 = dma.done.wait (%p870_p8), %s193_s11, 128  }
  0x39   : > { %769 = vsyncadd (%p870_p8), %s193_s11, 4294967168  ;;  %p228_p9 = scmp.lt.s32.totalorder %s788_s15, 1  ;;  %v240_v0 = vlaneseq  ;;  %v799_v1 = vmov 0   ;;  %v800_v4 = vmov 0.0   ;;  %v247_v7 = vld [vmem:[%s1055_s2] sm:$0xf] }
  0x3a   : > { %672 = vset.pattern.permute.xlu0 %v799_v1  ;;  %v245_v14 = vld [vmem:[%s196_s18] sm:$0xff]  ;;  %vm267_vm3 = vcmask 1043456   ;;  %vm469_vm4 = vcmask 1040384   ;;  %s225_s22 = scalar_lea.vmem [#allocation6], %s934_s5  ;;  %s601_s28 = sshll.u32 %s788_s15, 4 }
  0x3b   : > { %s229_s6 = scalar_select %p228_p9, %s788_s15, 1  ;;  %vm944_vm0 = vcmp.lt.s32.totalorder %v240_v0, 256  ;;  %v948_v3 = vshrl.u32 %v240_v0, 7  ;;  %360 = vperm.xlu0 %672, %v247_v7   ;;  %v265_v15 = vcombine.high %v245_v14, %v245_v14  ;;  %v268_v16 = vsel %vm267_vm3, %v245_v14, -inf }
  0x3c   : > { %244 = vst.msk [vmem:[#allocation2] sm:$0x3] %vm944_vm0, %v800_v4  ;;  %v269_v18 = vrot.slane %v268_v16, 4  ;;  %s497_s23 = sshll.u32 %s225_s22, 4  ;;  %s1006_s7 = scalar_lea.hbm %s1056_s3, %s601_s28  ;;  %s1001_s23 = int_to_ptr.vmem [resolvable:$true] %s497_s23 }
  0x3d   : > { %s598_s8 = sshll.u32 %s229_s6, 1  ;;  %v252_v5 = vsub.s32 0, %v948_v3  ;;  %v256_v6 = vsub.s32 1, %v948_v3  ;;  %v275_v17 = vsel %vm267_vm3, %v265_v15, -inf  ;;  %s485_s11 = scalar_lea.sflag [#allocation5], %s934_s5 }
  0x3e   : > { %s234_s10 = scalar_lea.vmem %s1054_s1, %s598_s8  ;;  %v276_v19 = vrot.slane %v275_v17, 4  ;;  %v270_v20 = vmax.f32 %v268_v16, %v269_v18  ;;  %s714_s18 = scalar_lea.vmem %s1001_s23, 16 }
  0x3f   : > { %v246_v8 = vld [vmem:[%s234_s10] sm:$0x3]  ;;  %p715_p8 = scmp.ne.s32.totalorder %s1001_s23, %s714_s18  ;;  %p1067_p11 = scmp.ne.s32.totalorder %s1060_s25, 0 }
  0x40   : > { %v253_v9 = vrot.slane %v246_v8, %v252_v5  ;;  %v257_v10 = vrot.slane %v246_v8, %v256_v6  ;;  %v277_v21 = vmax.f32 %v275_v17, %v276_v19  ;;  %v271_v22 = vrot.slane %v270_v20, 2  ;;  %s802_s15 = smov [#allocation6]  }
  0x41   : > { %p716_p0 = pnand %p715_p8, %p1067_p11  ;;  %s718_s6 = sshll.u32 %s802_s15, 4  ;;  %s719_s6 = int_to_ptr.vmem [resolvable:$false] %s718_s6 }
  0x42   : > { %vm258_vm1 = vcmp.eq.s32.totalorder %v948_v3, %v253_v9  ;;  %vm259_vm2 = vcmp.eq.s32.totalorder %v948_v3, %v257_v10  ;;  %v278_v23 = vrot.slane %v277_v21, 2  ;;  %v272_v24 = vmax.f32 %v270_v20, %v271_v22  ;;  %s720_s8 = scalar_lea.vmem %s719_s6, 32  ;;  %p721_p13 = scmp.lt.s32.totalorder %s1001_s23, %s719_s6 }
  0x43   : > { %v966_v11 = vsel %vm258_vm1, 1.0, %v800_v4  ;;  %v968_v12 = vsel %vm259_vm2, 1.0, %v800_v4  ;;  %p717_p7 = pneg %p716_p0  ;;  %p722_p3 = scmp.lt.s32.totalorder %s720_s8, %s714_s18 }
  0x44   : > { %v308_v13 = vcombine.low %v966_v11, %v968_v12  ;;  %v279_v25 = vmax.f32 %v277_v21, %v278_v23  ;;  %v273_v26 = vrot.slane %v272_v24, 1 }
  0x45   : > { %p723_p6 = por %p722_p3, %p721_p13 }
  0x46   : > { %v280_v27 = vrot.slane %v279_v25, 1  ;;  %v974_v28 = vmax.f32 %v272_v24, %v273_v26  ;;  %v310_v52 = vmul.f32 %v308_v13, %v245_v14 }
  0x47   : > { %p724_p4 = pnand %p723_p6, %p717_p7 }
  0x48   : > { %v976_v29 = vmax.f32 %v279_v25, %v280_v27  ;;  %v312_v57 = vcombine.high %v310_v52, %v310_v52  ;;  %v314_v61 = vsel %vm267_vm3, %v310_v52, 0.0 }
  0x49   : > { %v315_v1 = vrot.slane %v314_v61, 4 }
  0x4a   : > { %v284_v30 = vcombine.low %v974_v28, %v976_v29  ;;  %v321_v62 = vsel %vm267_vm3, %v312_v57, 0.0 }
  0x4b   : > { %v322_v4 = vrot.slane %v321_v62, 4  ;;  %v316_v9 = vadd.f32 %v315_v1, %v314_v61 }
  0x4c   : > { %v286_v31 = vsub.f32 %v245_v14, %v284_v30 }
  0x4d   : > { %v323_v10 = vadd.f32 %v322_v4, %v321_v62  ;;  %v317_v17 = vrot.slane %v316_v9, 2 }
  0x4e   : > { %v287_v32 = vmul.f32 1.442695, %v286_v31 }
  0x4f   : > { %v324_v18 = vrot.slane %v323_v10, 2  ;;  %v318_v22 = vadd.f32 %v317_v17, %v316_v9 }
  0x50   : > { %674 = vpow2.f32 %v287_v32 }
  0x51   : > { %v325_v23 = vadd.f32 %v324_v18, %v323_v10 }
  0x5a   : > { %v675_v33 = vpop.eup %674 }
  0x5b   : > { %v290_v34 = vcombine.high %v675_v33, %v675_v33  ;;  %v292_v35 = vsel %vm267_vm3, %v675_v33, 0.0  ;;  %v336_v39 = vmul.f32 %v675_v33, %v308_v13 }
  0x5c   : > { %v293_v37 = vrot.slane %v292_v35, 4 }
  0x5d   : > { %v299_v36 = vsel %vm267_vm3, %v290_v34, 0.0  ;;  %v338_v42 = vcombine.high %v336_v39, %v336_v39  ;;  %v340_v45 = vsel %vm267_vm3, %v336_v39, 0.0 }
  0x5e   : > { %v300_v38 = vrot.slane %v299_v36, 4  ;;  %v294_v40 = vadd.f32 %v293_v37, %v292_v35  ;;  %v341_v49 = vrot.slane %v340_v45, 4  ;;  %v326_v37 = vrot.slane %v325_v23, 1 }
  0x5f   : > { %v347_v46 = vsel %vm267_vm3, %v338_v42, 0.0 }
  0x60   : > { %v301_v41 = vadd.f32 %v300_v38, %v299_v36  ;;  %v295_v43 = vrot.slane %v294_v40, 2  ;;  %v348_v50 = vrot.slane %v347_v46, 4  ;;  %v342_v54 = vadd.f32 %v341_v49, %v340_v45 }
  0x61   : > { %v319_v36 = vrot.slane %v318_v22, 1 }
  0x62   : > { %v302_v44 = vrot.slane %v301_v41, 2  ;;  %v296_v47 = vadd.f32 %v295_v43, %v294_v40  ;;  %v349_v55 = vadd.f32 %v348_v50, %v347_v46  ;;  %v343_v59 = vrot.slane %v342_v54, 2 }
  0x63   : > { %v320_v46 = vadd.f32 %v319_v36, %v318_v22 }
  0x64   : > { %v303_v48 = vadd.f32 %v302_v44, %v301_v41  ;;  %v297_v51 = vrot.slane %v296_v47, 1  ;;  %v350_v60 = vrot.slane %v349_v55, 2  ;;  %v344_v63 = vadd.f32 %v343_v59, %v342_v54 }
  0x65   : > { %v801_v44 = vmov 1966171168  }
  0x66   : > { %v304_v53 = vrot.slane %v303_v48, 1  ;;  %v298_v56 = vadd.f32 %v297_v51, %v296_v47  ;;  %v351_v0 = vadd.f32 %v350_v60, %v349_v55  ;;  %v345_v7 = vrot.slane %v344_v63, 1 }
  0x67   : > { %v437_v45 = vunpack.c.l.s4 %v801_v44  ;;  %v327_v47 = vadd.f32 %v326_v37, %v325_v23 }
  0x68   : > { %v305_v58 = vadd.f32 %v304_v53, %v303_v48  ;;  %676 = vrcp.f32 %v298_v56  ;;  %v352_v8 = vrot.slane %v351_v0, 1  ;;  %v346_v14 = vadd.f32 %v345_v7, %v344_v63 }
  0x6a   : > { %678 = vrcp.f32 %v305_v58  ;;  %v353_v15 = vadd.f32 %v352_v8, %v351_v0 }
  0x6b   : > { %680 = vlog2.f32 %v298_v56  ;;  %v438_v56 = vunpack.c.0.s8 %v437_v45 }
  0x6c   : > { %682 = vlog2.f32 %v305_v58 }
  0x6d   : > { %v441_v63 = vsub.s32 %v438_v56, %v948_v3 }
  0x72   : > { %v677_v13 = vpop.eup %676 }
  0x73   : > { %v355_v20 = vmul.f32 %v677_v13, %v346_v14 }
  0x74   : > { %v679_v16 = vpop.eup %678 }
  0x75   : > { %v357_v21 = vmul.f32 %v679_v16, %v353_v15  ;;  %v681_v26 = vpop.eup %680  ;;  %v379_v34 = vsub.f32 1.0, %v355_v20 }
  0x76   : > { %v683_v27 = vpop.eup %682  ;;  %v329_v38 = vmul.f32 0.6931472, %v681_v26 }
  0x77   : > { %v380_v35 = vsub.f32 1.0, %v357_v21  ;;  %v331_v39 = vmul.f32 0.6931472, %v683_v27  ;;  %v381_v43 = vadd.f32 1e-06, %v379_v34 }
  0x78   : > { %v332_v48 = vadd.f32 %v329_v38, %v974_v28 }
  0x79   : > { %v333_v49 = vadd.f32 %v331_v39, %v976_v29  ;;  %v383_v54 = vmul.f32 %v381_v43, %v381_v43  ;;  %v428_v29 = vld [vmem:[#allocation2] sm:$0x3] }
  0x7a   : > { %v334_v57 = vsub.f32 %v332_v48, %v320_v46 }
  0x7b   : > { %v335_v58 = vsub.f32 %v333_v49, %v327_v47 }
  0xba   : > { %v361_v19 = vpop.permute.xlu0 %360 }
  0xbb   : > { %v363_v24 = vmul.f32 %v966_v11, %v361_v19  ;;  %v364_v25 = vmul.f32 %v968_v12, %v361_v19  ;;  %v382_v12 = vadd.f32 1e-06, %v380_v35 }
  0xbd   : > { %v365_v30 = vsel %vm267_vm3, %v363_v24, 0.0  ;;  %v372_v31 = vsel %vm267_vm3, %v364_v25, 0.0  ;;  %v384_v55 = vmul.f32 %v382_v12, %v382_v12 }
  0xbe   : > { %v366_v32 = vrot.slane %v365_v30, 4  ;;  %v373_v33 = vrot.slane %v372_v31, 4 }
  0xc0   : > { %v367_v40 = vadd.f32 %v366_v32, %v365_v30  ;;  %v374_v41 = vadd.f32 %v373_v33, %v372_v31 }
  0xc2   : > { %v368_v42 = vrot.slane %v367_v40, 2  ;;  %v375_v11 = vrot.slane %v374_v41, 2 }
  0xc4   : > { %v369_v50 = vadd.f32 %v368_v42, %v367_v40  ;;  %v376_v51 = vadd.f32 %v375_v11, %v374_v41 }
  0xc6   : > { %v370_v52 = vrot.slane %v369_v50, 1  ;;  %v377_v53 = vrot.slane %v376_v51, 1 }
  0xc8   : > { %v371_v59 = vadd.f32 %v370_v52, %v369_v50  ;;  %v378_v60 = vadd.f32 %v377_v53, %v376_v51 }
  0xca   : > { %v385_v61 = vmul.f32 %v383_v54, %v371_v59  ;;  %v386_v62 = vmul.f32 %v384_v55, %v378_v60 }
  0xcc   : > { %v387_v0 = vmul.f32 %v385_v61, %v334_v57  ;;  %v388_v1 = vmul.f32 %v386_v62, %v335_v58 }
  0xce   : > { %v435_v28 = vcombine.low %v387_v0, %v388_v1 }
  0xd0   : > { %v442_v4 = vrot.slane %v435_v28, %v441_v63 }
  0xd2   : > { %v449_v7 = vrot.slane %v442_v4, %v441_v63 }
  0xd4   : > { %v451_v8 = vadd.f32 %v449_v7, %v428_v29 }
  0xd6   : > { %456 = vst.msk [vmem:[#allocation2] sm:$0x3] %vm944_vm0, %v451_v8 }
  0xdd   : > { %v457_v9 = vld [vmem:[#allocation2] sm:$0x3] }
  0xde   : > { %v462_v10 = vrot.slane %v457_v9, %v252_v5  ;;  %v466_v13 = vrot.slane %v457_v9, %v256_v6 }
  0xe0   : > { %v470_v14 = vsel %vm469_vm4, %v462_v10, 0.0  ;;  %v471_v15 = vsel %vm469_vm4, %v466_v13, 0.0 }
  0xe1   : > { %v472_v16 = vadd.f32 %v471_v15, %v470_v14 }
  0xe3   : > { %473 = vadd.xlane.f32.xlu0 %v472_v16 }
 0x170   : > { %v474_v17 = vpop.xlane.xlu0 %473 }
 0x171   : > { %v475_v18 = vrot.slane %v474_v17, 4 }
 0x173   : > { %v476_v19 = vadd.f32 %v475_v18, %v474_v17 }
 0x175   : > { %v477_v2 = vrot.slane %v476_v19, 2 }
 0x177   : > { %v478_v20 = vadd.f32 %v477_v2, %v476_v19 }
 0x179   : > { %v479_v21 = vrot.slane %v478_v20, 1 }
 0x17b   : > { %v480_v22 = vadd.f32 %v479_v21, %v478_v20 }
 0x17d   : > { %605 = vpush %v480_v22 }
 0x1ae   : > { %s606_s29 = spop %605 }
 0x1af   : > { %v482_v3 = vstv %s606_s29 }
 0x1b0   : > { %483 = vst [vmem:[%s225_s22] sm:$0x1] %v482_v3 }
 0x1b1   : > { %727 = shalt.err (!%p724_p4)
}
 0x1b2   : > { %s728_s5 = scalar_lea.hbm %s1006_s7, 16  ;;  %s732_s10 = scalar_lea.hbm %s1056_s3, 32 }
 0x1b3   : > { %p729_p10 = scmp.ne.s32.totalorder %s1006_s7, %s728_s5  ;;  %p733_p2 = scmp.lt.u32.totalorder %s1006_s7, %s1056_s3 }
 0x1b4   : > { %p734_p5 = scmp.lt.u32.totalorder %s732_s10, %s728_s5  ;;  %p736_p8 = scmp.lt.u32.totalorder %s728_s5, %s1006_s7 }
 0x1b5   : > { %p730_p12 = pnand %p729_p10, %p1067_p11 }
 0x1b6   : > { %p735_p9 = por %p734_p5, %p733_p2 }
 0x1b7   : > { %p731_p1 = pneg %p730_p12 }
 0x1b8   : > { %p737_p0 = por %p736_p8, %p735_p9 }
 0x1ba   : > { %p738_p7 = pnand %p737_p0, %p731_p1 }
 0x1bc   : > { %741 = shalt.err (!%p738_p7)
}
 0x1bd   : > { %609 = dma.vmem_to_hbm [thread:$0]  (%p1067_p11), %s1001_s23, 16, %s1006_s7, %s485_s11  }
 0x1be PF: > { %s509_s22 = sand.u32 1, %s776_s12   ;;  %p1068_p13 = scmp.ne.s32.totalorder %s1061_s27, 0 }
 0x1bf   : > { %p1069_p3 = scmp.ge.s32.totalorder %s796_s17, 2  ;;  %s510_s28 = scalar_lea.sflag [#allocation5], %s509_s22 }
 0x1c1   : > { %p616_p6 = pnand %p1069_p3, %p1068_p13 }
 0x1c3   : > { %771 = dma.done.wait (!%p616_p6), %s510_s28, 16  }
 0x1c4   : > { %773 = vsyncadd (!%p616_p6), %s510_s28, 4294967280  ;;  %s19_s17 = sadd.s32 1, %s796_s17   ;;  %s1070_s12 = smov %s780_s13 }
 0x1c5   : > { %p16_p4 = scmp.ge.s32.totalorder %s19_s17, 4   ;;  %s1071_s13 = smov %s784_s14 }
 0x1c6   : > { %s1072_s14 = smov %s879_s26  ;;  %s1073_s15 = smov %s792_s16 }
 0x1c7   : > { %s1074_s16 = smov %s1076_s20  ;;  %18 = sbr.rel (!%p16_p4) target bundleno = 6 (0x6), region = 92 }
 0x1ce   :  { %514 = vsyncpa [#allocation4], 1 }
 0x1cf   :  { %516 = vsyncpa [#allocation4 + $0x1], 1 }
 0x1d0   :  { %517 = vsyncpa [#allocation5], 1 }
 0x1d1   :  { %519 = vsyncpa [#allocation5 + $0x1], 1 }

</bundles_post_ra>
